<compile_context>
chip_gen: v5e
topology: v5e:2x2
jax: 0.10.0
libtpu: 0.0.40
codegen_flags: <defaults>
</compile_context>

<pallas_src>
import functools
import math

import jax
import jax.numpy as jnp
from jax.experimental import pallas as pl
from jax.experimental.pallas import tpu as pltpu


def _round_up(v, m):
    return ((v + m - 1) // m) * m


# ----------------------------------------------------------------------------
# Fused 4-layer MLP kernel (one batch tile per grid step)
# ----------------------------------------------------------------------------
def _mlp_kernel(x_ref, w1_ref, b1_ref, w2_ref, b2_ref, w3_ref, b3_ref,
                w4_ref, b4_ref, o_ref, *, slope):
    def layer(h, w_ref, b_ref, act):
        # Cast only the MXU operands to the weight dtype (bf16); accumulate in
        # f32; keep bias-add / leaky-ReLU in f32 (v5e VPU has no bf16).
        y = jnp.dot(h.astype(w_ref.dtype), w_ref[...],
                    preferred_element_type=jnp.float32)
        y = y + b_ref[...]
        if act:
            # leaky_relu(x) = max(x, slope*x) for 0 < slope < 1
            y = jnp.maximum(y, slope * y)
        return y

    h = x_ref[...].astype(jnp.float32)
    h = layer(h, w1_ref, b1_ref, True)
    # TODO(synk): nn.Dropout(0.3) treated as identity (eval / inference mode).
    # For training, draw the keep-mask once per tile with pltpu.prng_seed +
    # pltpu.prng_random_bits instead of per-layer broadcasted jnp.where.
    h = layer(h, w2_ref, b2_ref, True)
    h = layer(h, w3_ref, b3_ref, True)
    h = layer(h, w4_ref, b4_ref, False)
    o_ref[...] = h.astype(o_ref.dtype)


# ----------------------------------------------------------------------------
# One-time parameter preparation (pad hidden dims to 128 lanes, cast to bf16)
# ----------------------------------------------------------------------------
def prepare_params(params, *, lane=128, mxu_dtype=jnp.bfloat16):
    """Call ONCE after init (not per forward).

    Zero-padding is exact: padded hidden columns get zero weights/bias so the
    corresponding activations are exactly 0 and hit zero rows of the next
    weight.  Layer-1 input rows and layer-4 output columns stay UNPADDED so
    x goes in and the output comes out without per-call pad/slice work.
    """
    dims_in = [params[f"w{i}"].shape[0] for i in range(1, 5)]
    dims_out = [params[f"w{i}"].shape[1] for i in range(1, 5)]
    pin = [dims_in[0]] + [_round_up(d, lane) for d in dims_in[1:]]
    pout = [_round_up(d, lane) for d in dims_out[:3]] + [dims_out[3]]

    prepared = {"G_in": dims_in[0], "G_out": dims_out[3]}
    for i in range(4):
        w = jnp.pad(params[f"w{i + 1}"],
                    ((0, pin[i] - dims_in[i]), (0, pout[i] - dims_out[i])))
        b = jnp.pad(params[f"b{i + 1}"],
                    (0, pout[i] - dims_out[i])).reshape(1, pout[i])
        prepared[f"w{i + 1}"] = w.astype(mxu_dtype)
        prepared[f"b{i + 1}"] = b.astype(jnp.float32)
    return prepared


# ----------------------------------------------------------------------------
# Forward pass
# ----------------------------------------------------------------------------
def dnn_encoder_forward(x, prepared, *, slope=0.01, max_tb=256):
    """x: (B, G_in) f32.  prepared: output of prepare_params()."""
    B, G_in = x.shape
    assert prepared["w1"].shape[0] == G_in
    G_out = prepared["w4"].shape[1]

    # Batch tiling: one big tile per grid step (128-256 rows) to amortize the
    # per-step overhead and MXU fill; at small B the whole batch is one step.
    Bp = _round_up(B, 8)
    if Bp <= max_tb:
        tb = Bp
    else:
        tb = max_tb
        Bp = _round_up(Bp, tb)
    xp = x if Bp == B else jnp.pad(x, ((0, Bp - B), (0, 0)))

    # Input tile walks the batch; weights/biases are whole-array blocks with
    # constant index_maps, so they are DMA'd into VMEM once and stay resident.
    # (The shadowed lambda parameter `i` is harmless: the maps return
    #  constants, there is no late-binding capture.)
    in_specs = [pl.BlockSpec((tb, G_in), lambda i: (i, 0))]
    for li in range(1, 5):
        in_specs.append(pl.BlockSpec(prepared[f"w{li}"].shape, lambda i: (0, 0)))
        in_specs.append(pl.BlockSpec(prepared[f"b{li}"].shape, lambda i: (0, 0)))

    # VMEM budget derived from the actual resident footprint (x2 for the
    # pipeline's double buffers) + headroom, instead of a fixed 32 MiB.
    def _nbytes(a):
        return math.prod(a.shape) * jnp.dtype(a.dtype).itemsize

    resident = sum(_nbytes(prepared[f"w{li}"]) + _nbytes(prepared[f"b{li}"])
                   for li in range(1, 5))
    resident += tb * G_in * 4 + tb * G_out * 4
    vmem_limit = min(128 * 1024 * 1024, max(4 * 1024 * 1024,
                                            2 * resident + 2 * 1024 * 1024))

    out = pl.pallas_call(
        functools.partial(_mlp_kernel, slope=slope),
        out_shape=jax.ShapeDtypeStruct((Bp, G_out), x.dtype),
        grid_spec=pltpu.PrefetchScalarGridSpec(
            num_scalar_prefetch=0,
            grid=(Bp // tb,),
            in_specs=in_specs,
            out_specs=pl.BlockSpec((tb, G_out), lambda i: (i, 0)),
        ),
        compiler_params=pltpu.CompilerParams(
            dimension_semantics=("parallel",),
            vmem_limit_bytes=int(vmem_limit),
        ),
    )(xp,
      prepared["w1"], prepared["b1"], prepared["w2"], prepared["b2"],
      prepared["w3"], prepared["b3"], prepared["w4"], prepared["b4"])

    return out if Bp == B else out[:B]


# ----------------------------------------------------------------------------
# Params (PyTorch-Linear-style uniform init) and plain-JAX reference
# ----------------------------------------------------------------------------
def init_params(key, G_in, G_out, w1, w2, w3):
    dims = [(G_in, w1), (w1, w2), (w2, w3), (w3, G_out)]
    params = {}
    for i, (cin, cout) in enumerate(dims, start=1):
        key, k1, k2 = jax.random.split(key, 3)
        bound = 1.0 / jnp.sqrt(jnp.float32(cin))
        params[f"w{i}"] = jax.random.uniform(
            k1, (cin, cout), jnp.float32, -bound, bound)
        params[f"b{i}"] = jax.random.uniform(
            k2, (cout,), jnp.float32, -bound, bound)
    return params


def reference_forward(x, params, slope=0.01):
    def lrelu(v):
        return jnp.where(v > 0, v, slope * v)

    h = lrelu(x @ params["w1"] + params["b1"])
    h = lrelu(h @ params["w2"] + params["b2"])
    h = lrelu(h @ params["w3"] + params["b3"])
    return h @ params["w4"] + params["b4"]


if __name__ == "__main__":
    key = jax.random.PRNGKey(0)
    pkey, xkey = jax.random.split(key)

    # Small shapes consistent with the module:
    # dnn_encoder(G_in=16, G_out=8, w1=32, w2=64, w3=32), batch=16
    # (-> a single 16-row grid step at this batch size).
    G_in, G_out, w1, w2, w3 = 16, 8, 32, 64, 32
    B = 16
    params = init_params(pkey, G_in, G_out, w1, w2, w3)
    prepared = prepare_params(params)            # one-time: pad + bf16 cast
    x = jax.random.normal(xkey, (B, G_in), jnp.float32)

    fwd = jax.jit(dnn_encoder_forward)
    out = jax.block_until_ready(fwd(x, prepared))
    ref = jax.block_until_ready(reference_forward(x, params))

    assert out.shape == (B, G_out), out.shape
    # Tolerance reflects bf16 MXU operands with f32 accumulation vs f32 ref.
    assert bool(jnp.allclose(out, ref, rtol=2e-2, atol=2e-2)), (
        "max abs diff", float(jnp.max(jnp.abs(out - ref))))

    print("KERNEL_OK")
</pallas_src>

<mosaic_0001>
module attributes {stable_mosaic.version = 11 : i64} {
  func.func @_mlp_kernel(%arg0: i32, %arg1: memref<16x16xf32, #tpu.memory_space<vmem>>, %arg2: memref<16x128xbf16, #tpu.memory_space<vmem>>, %arg3: memref<1x128xf32, #tpu.memory_space<vmem>>, %arg4: memref<128x128xbf16, #tpu.memory_space<vmem>>, %arg5: memref<1x128xf32, #tpu.memory_space<vmem>>, %arg6: memref<128x128xbf16, #tpu.memory_space<vmem>>, %arg7: memref<1x128xf32, #tpu.memory_space<vmem>>, %arg8: memref<128x8xbf16, #tpu.memory_space<vmem>>, %arg9: memref<1x8xf32, #tpu.memory_space<vmem>>, %arg10: memref<16x8xf32, #tpu.memory_space<vmem>>) attributes {dimension_semantics = [#tpu.dimension_semantics<parallel>], iteration_bounds = array<i64: 1>, scalar_prefetch = 0 : i64, scratch_operands = 0 : i64, tpu.core_type = #tpu.core_type<tc>, window_params = [{transform_indices = @transform_0, window_bounds = array<i64: 16, 16>}, {pipeline_mode = #tpu.pipeline_mode<synchronous>, transform_indices = @transform_1, window_bounds = array<i64: 16, 128>}, {pipeline_mode = #tpu.pipeline_mode<synchronous>, transform_indices = @transform_2, window_bounds = array<i64: 1, 128>}, {pipeline_mode = #tpu.pipeline_mode<synchronous>, transform_indices = @transform_3, window_bounds = array<i64: 128, 128>}, {pipeline_mode = #tpu.pipeline_mode<synchronous>, transform_indices = @transform_4, window_bounds = array<i64: 1, 128>}, {pipeline_mode = #tpu.pipeline_mode<synchronous>, transform_indices = @transform_5, window_bounds = array<i64: 128, 128>}, {pipeline_mode = #tpu.pipeline_mode<synchronous>, transform_indices = @transform_6, window_bounds = array<i64: 1, 128>}, {pipeline_mode = #tpu.pipeline_mode<synchronous>, transform_indices = @transform_7, window_bounds = array<i64: 128, 8>}, {pipeline_mode = #tpu.pipeline_mode<synchronous>, transform_indices = @transform_8, window_bounds = array<i64: 1, 8>}, {transform_indices = @transform_9, window_bounds = array<i64: 16, 8>}]} {
    %c0 = arith.constant 0 : index
    %c0_0 = arith.constant 0 : index
    %0 = vector.load %arg1[%c0, %c0_0] : memref<16x16xf32, #tpu.memory_space<vmem>>, vector<16x16xf32>
    %1 = arith.truncf %0 : vector<16x16xf32> to vector<16x16xbf16>
    %c0_1 = arith.constant 0 : index
    %c0_2 = arith.constant 0 : index
    %2 = vector.load %arg2[%c0_1, %c0_2] : memref<16x128xbf16, #tpu.memory_space<vmem>>, vector<16x128xbf16>
    %cst = arith.constant dense<0.000000e+00> : vector<16x128xf32>
    %3 = tpu.matmul %1, %2, %cst {dimension_numbers = #tpu.dot_dimension_numbers<[1], [0], [0], [1], [0, 0, 1, 1], [], []>} : vector<16x16xbf16>, vector<16x128xbf16>, vector<16x128xf32> -> vector<16x128xf32>
    %c0_3 = arith.constant 0 : index
    %c0_4 = arith.constant 0 : index
    %4 = vector.load %arg3[%c0_3, %c0_4] : memref<1x128xf32, #tpu.memory_space<vmem>>, vector<1x128xf32>
    %5 = vector.broadcast %4 : vector<1x128xf32> to vector<16x128xf32>
    %6 = arith.addf %3, %5 : vector<16x128xf32>
    %cst_5 = arith.constant 0.00999999977 : f32
    %7 = vector.broadcast %cst_5 : f32 to vector<16x128xf32>
    %8 = arith.mulf %7, %6 : vector<16x128xf32>
    %9 = arith.maximumf %6, %8 : vector<16x128xf32>
    %10 = arith.truncf %9 : vector<16x128xf32> to vector<16x128xbf16>
    %c0_6 = arith.constant 0 : index
    %c0_7 = arith.constant 0 : index
    %11 = vector.load %arg4[%c0_6, %c0_7] : memref<128x128xbf16, #tpu.memory_space<vmem>>, vector<128x128xbf16>
    %cst_8 = arith.constant dense<0.000000e+00> : vector<16x128xf32>
    %12 = tpu.matmul %10, %11, %cst_8 {dimension_numbers = #tpu.dot_dimension_numbers<[1], [0], [0], [1], [0, 0, 1, 1], [], []>} : vector<16x128xbf16>, vector<128x128xbf16>, vector<16x128xf32> -> vector<16x128xf32>
    %c0_9 = arith.constant 0 : index
    %c0_10 = arith.constant 0 : index
    %13 = vector.load %arg5[%c0_9, %c0_10] : memref<1x128xf32, #tpu.memory_space<vmem>>, vector<1x128xf32>
    %14 = vector.broadcast %13 : vector<1x128xf32> to vector<16x128xf32>
    %15 = arith.addf %12, %14 : vector<16x128xf32>
    %cst_11 = arith.constant 0.00999999977 : f32
    %16 = vector.broadcast %cst_11 : f32 to vector<16x128xf32>
    %17 = arith.mulf %16, %15 : vector<16x128xf32>
    %18 = arith.maximumf %15, %17 : vector<16x128xf32>
    %19 = arith.truncf %18 : vector<16x128xf32> to vector<16x128xbf16>
    %c0_12 = arith.constant 0 : index
    %c0_13 = arith.constant 0 : index
    %20 = vector.load %arg6[%c0_12, %c0_13] : memref<128x128xbf16, #tpu.memory_space<vmem>>, vector<128x128xbf16>
    %cst_14 = arith.constant dense<0.000000e+00> : vector<16x128xf32>
    %21 = tpu.matmul %19, %20, %cst_14 {dimension_numbers = #tpu.dot_dimension_numbers<[1], [0], [0], [1], [0, 0, 1, 1], [], []>} : vector<16x128xbf16>, vector<128x128xbf16>, vector<16x128xf32> -> vector<16x128xf32>
    %c0_15 = arith.constant 0 : index
    %c0_16 = arith.constant 0 : index
    %22 = vector.load %arg7[%c0_15, %c0_16] : memref<1x128xf32, #tpu.memory_space<vmem>>, vector<1x128xf32>
    %23 = vector.broadcast %22 : vector<1x128xf32> to vector<16x128xf32>
    %24 = arith.addf %21, %23 : vector<16x128xf32>
    %cst_17 = arith.constant 0.00999999977 : f32
    %25 = vector.broadcast %cst_17 : f32 to vector<16x128xf32>
    %26 = arith.mulf %25, %24 : vector<16x128xf32>
    %27 = arith.maximumf %24, %26 : vector<16x128xf32>
    %28 = arith.truncf %27 : vector<16x128xf32> to vector<16x128xbf16>
    %c0_18 = arith.constant 0 : index
    %c0_19 = arith.constant 0 : index
    %29 = vector.load %arg8[%c0_18, %c0_19] : memref<128x8xbf16, #tpu.memory_space<vmem>>, vector<128x8xbf16>
    %cst_20 = arith.constant dense<0.000000e+00> : vector<16x8xf32>
    %30 = tpu.matmul %28, %29, %cst_20 {dimension_numbers = #tpu.dot_dimension_numbers<[1], [0], [0], [1], [0, 0, 1, 1], [], []>} : vector<16x128xbf16>, vector<128x8xbf16>, vector<16x8xf32> -> vector<16x8xf32>
    %c0_21 = arith.constant 0 : index
    %c0_22 = arith.constant 0 : index
    %31 = vector.load %arg9[%c0_21, %c0_22] : memref<1x8xf32, #tpu.memory_space<vmem>>, vector<1x8xf32>
    %32 = vector.broadcast %31 : vector<1x8xf32> to vector<16x8xf32>
    %33 = arith.addf %30, %32 : vector<16x8xf32>
    %c0_23 = arith.constant 0 : index
    %c0_24 = arith.constant 0 : index
    %34 = vector.load %arg10[%c0_23, %c0_24] : memref<16x8xf32, #tpu.memory_space<vmem>>, vector<16x8xf32>
    tpu.vector_store %arg10[%c0_23, %c0_24], %33 {strides = array<i32>} : memref<16x8xf32, #tpu.memory_space<vmem>>, vector<16x8xf32>,
    return
  }
  func.func @transform_0(%arg0: i32) -> (i32, i32) {
    %c0_i32 = arith.constant 0 : i32
    %c0_i32_0 = arith.constant 0 : i32
    return %arg0, %c0_i32 : i32, i32
  }
  func.func @transform_1(%arg0: i32) -> (i32, i32) {
    %c0_i32 = arith.constant 0 : i32
    %c0_i32_0 = arith.constant 0 : i32
    %c0_i32_1 = arith.constant 0 : i32
    return %c0_i32, %c0_i32_0 : i32, i32
  }
  func.func @transform_2(%arg0: i32) -> (i32, i32) {
    %c0_i32 = arith.constant 0 : i32
    %c0_i32_0 = arith.constant 0 : i32
    %c0_i32_1 = arith.constant 0 : i32
    return %c0_i32, %c0_i32_0 : i32, i32
  }
  func.func @transform_3(%arg0: i32) -> (i32, i32) {
    %c0_i32 = arith.constant 0 : i32
    %c0_i32_0 = arith.constant 0 : i32
    %c0_i32_1 = arith.constant 0 : i32
    return %c0_i32, %c0_i32_0 : i32, i32
  }
  func.func @transform_4(%arg0: i32) -> (i32, i32) {
    %c0_i32 = arith.constant 0 : i32
    %c0_i32_0 = arith.constant 0 : i32
    %c0_i32_1 = arith.constant 0 : i32
    return %c0_i32, %c0_i32_0 : i32, i32
  }
  func.func @transform_5(%arg0: i32) -> (i32, i32) {
    %c0_i32 = arith.constant 0 : i32
    %c0_i32_0 = arith.constant 0 : i32
    %c0_i32_1 = arith.constant 0 : i32
    return %c0_i32, %c0_i32_0 : i32, i32
  }
  func.func @transform_6(%arg0: i32) -> (i32, i32) {
    %c0_i32 = arith.constant 0 : i32
    %c0_i32_0 = arith.constant 0 : i32
    %c0_i32_1 = arith.constant 0 : i32
    return %c0_i32, %c0_i32_0 : i32, i32
  }
  func.func @transform_7(%arg0: i32) -> (i32, i32) {
    %c0_i32 = arith.constant 0 : i32
    %c0_i32_0 = arith.constant 0 : i32
    %c0_i32_1 = arith.constant 0 : i32
    return %c0_i32, %c0_i32_0 : i32, i32
  }
  func.func @transform_8(%arg0: i32) -> (i32, i32) {
    %c0_i32 = arith.constant 0 : i32
    %c0_i32_0 = arith.constant 0 : i32
    %c0_i32_1 = arith.constant 0 : i32
    return %c0_i32, %c0_i32_0 : i32, i32
  }
  func.func @transform_9(%arg0: i32) -> (i32, i32) {
    %c0_i32 = arith.constant 0 : i32
    %c0_i32_0 = arith.constant 0 : i32
    return %arg0, %c0_i32 : i32, i32
  }
}

</mosaic_0001>

<bundles_post_ra>
// kernel: dnn_encoder_forward.1
= control target key start
LH: loop header
LB: loop body
LE: loop exit
PB: predicated region body
PF: predicated region fallthrough
CT: control target
= control target key end

     0   :  { %14 = vsyncpa [#allocation3], 0  ;;  %s728_s0 = inlined_call_operand.hbm [shape: f32[16,16], index: 0, kind: input, shape index: {}]   ;;  %s729_s1 = inlined_call_operand.hbm [shape: bf16[16,128], index: 1, kind: input, shape index: {}]   ;;  %s730_s2 = inlined_call_operand.vmem [shape: f32[1,128], index: 2, kind: input, shape index: {}]   ;;  %s731_s3 = inlined_call_operand.vmem [shape: bf16[128,128], index: 3, kind: input, shape index: {}]   ;;  %s732_s4 = inlined_call_operand.vmem [shape: f32[1,128], index: 4, kind: input, shape index: {}]   ;;  %s733_s5 = inlined_call_operand.hbm [shape: bf16[128,128], index: 5, kind: input, shape index: {}]   ;;  %s734_s6 = inlined_call_operand.vmem [shape: f32[1,128], index: 6, kind: input, shape index: {}]   ;;  %s735_s7 = inlined_call_operand.vmem [shape: bf16[128,8], index: 7, kind: input, shape index: {}]   ;;  %s736_s8 = inlined_call_operand.vmem [shape: f32[1,8], index: 8, kind: input, shape index: {}]   ;;  %s737_s9 = inlined_call_operand.vmem [shape: f32[16,8], index: 9, kind: output, shape index: {}]  }
   0x1   :  { %15 = vsyncpa [#allocation5], 0  ;;  %s33_s11 = sshll.u32 %s729_s1, 4  ;;  %s596_s12 = smov [#allocation4]   ;;  %s34_s11 = int_to_ptr.hbm [resolvable:$true] %s33_s11 }
   0x2   :  { %s35_s13 = sshll.u32 %s596_s12, 4  ;;  %s20_s16 = sshll.u32 %s728_s0, 4  ;;  %s36_s13 = int_to_ptr.vmem [resolvable:$true] %s35_s13  ;;  %s21_s16 = int_to_ptr.hbm [resolvable:$true] %s20_s16 }
   0x3   :  { %s597_s17 = smov 64   ;;  %s598_s18 = smov 4  }
   0x4   :  { %41 = dma.hbm_to_vmem [thread:$0]  %s34_s11, 128, %s36_s13, [#allocation5], %s597_s17, %s597_s17, %s598_s18  }
   0x5   :  { %s599_s19 = smov [#allocation2]   ;;  %s600_s21 = smov 128  }
   0x6   :  { %s22_s20 = sshll.u32 %s599_s19, 4  ;;  %s601_s22 = smov 8   ;;  %s23_s20 = int_to_ptr.vmem [resolvable:$true] %s22_s20 }
   0x7   :  { %28 = dma.hbm_to_vmem [thread:$0]  %s21_s16, 256, %s23_s20, [#allocation3], %s600_s21, %s600_s21, %s601_s22  }
   0x8   :  { %s52_s24 = sshll.u32 %s733_s5, 4  ;;  %s602_s25 = smov [#allocation6]   ;;  %s53_s24 = int_to_ptr.hbm [resolvable:$true] %s52_s24 }
   0x9   :  { %s54_s26 = sshll.u32 %s602_s25, 4  ;;  %s55_s26 = int_to_ptr.vmem [resolvable:$true] %s54_s26 }
   0xa   :  { %60 = dma.hbm_to_vmem [thread:$0]  %s53_s24, 1024, %s55_s26, [#allocation5], %s597_s17, %s597_s17, %s598_s18  }
   0xb   :  { %592 = dma.done.wait [#allocation3], 256  }
   0xc   :  { %593 = vsyncadd [#allocation3], 4294967040 }
   0xd   :  { %594 = dma.done.wait [#allocation5], 1152  }
   0xe   :  { %595 = vsyncadd [#allocation5], 4294966144  ;;  %v484_v0 = vld [vmem:[#allocation4] sm:$0xff]  ;;  %v80_v1 = vld [vmem:[#allocation2] sm:$0xff]  ;;  %vm95_vm0 = vcmask 130048   ;;  %vm374_vm1 = vcmask 64512  }
   0xf   :  { %v81_v2 = vld [vmem:[#allocation2 + $0x8] sm:$0xff]  ;;  %v492_v4 = vld [vmem:[%s731_s3 + $0x38] sm:$0xff]  ;;  %106 = vmatpush.bf16.msra.mxu0 %v484_v0  ;;  %v491_v5 = vld [vmem:[%s731_s3 + $0x30] sm:$0xff] }
  0x10   :  { %v82_v3 = vpack.c.bf16 %v81_v2, %v80_v1  ;;  %186 = vmatpush.bf16.msra.mxu1 %v492_v4  ;;  %v490_v6 = vld [vmem:[%s731_s3 + $0x28] sm:$0xff]  ;;  %v489_v7 = vld [vmem:[%s731_s3 + $0x20] sm:$0xff]  ;;  %v488_v8 = vld [vmem:[%s731_s3 + $0x18] sm:$0xff] }
  0x11   :  { %v487_v9 = vld [vmem:[%s731_s3 + $0x10] sm:$0xff]  ;;  %v486_v10 = vld [vmem:[%s731_s3 + $0x8] sm:$0xff]  ;;  %v485_v11 = vld [vmem:[%s731_s3] sm:$0xff] }
  0x12   :  { %387 = vmatmul.msk.bf16.vlgmr.msra.gmra.mxu0 %vm95_vm0, %v82_v3  ;;  %v500_v12 = vld [vmem:[#allocation6 + $0x38] sm:$0xff]  ;;  %v499_v13 = vld [vmem:[#allocation6 + $0x30] sm:$0xff]  ;;  %v498_v14 = vld [vmem:[#allocation6 + $0x28] sm:$0xff] }
  0x13   :  { %273 = vmatpush.bf16.msra.mxu2 %v500_v12  ;;  %v497_v15 = vld [vmem:[#allocation6 + $0x20] sm:$0xff]  ;;  %v516_v17 = vld [vmem:[%s730_s2] ss:$0 sm:$0xff]  ;;  %v496_v26 = vld [vmem:[#allocation6 + $0x18] sm:$0xff] }
  0x14   :  { %187 = vmatpush.bf16.msra.mxu1 %v491_v5  ;;  %v495_v27 = vld [vmem:[#allocation6 + $0x10] sm:$0xff]  ;;  %v494_v28 = vld [vmem:[#allocation6 + $0x8] sm:$0xff]  ;;  %v493_v29 = vld [vmem:[#allocation6] sm:$0xff] }
  0x15   :  { %v508_v30 = vld [vmem:[%s735_s7 + $0x38] sm:$0xff]  ;;  %v507_v31 = vld [vmem:[%s735_s7 + $0x30] sm:$0xff]  ;;  %v506_v32 = vld [vmem:[%s735_s7 + $0x28] sm:$0xff] }
  0x16   :  { %360 = vmatpush.bf16.msra.mxu3 %v508_v30  ;;  %v505_v33 = vld [vmem:[%s735_s7 + $0x20] sm:$0xff]  ;;  %v504_v44 = vld [vmem:[%s735_s7 + $0x18] sm:$0xff]  ;;  %v503_v45 = vld [vmem:[%s735_s7 + $0x10] sm:$0xff] }
  0x17   :  { %274 = vmatpush.bf16.msra.mxu2 %v499_v13  ;;  %v517_v35 = vld [vmem:[%s732_s4] ss:$0 sm:$0xff]  ;;  %v502_v46 = vld [vmem:[%s735_s7 + $0x8] sm:$0xff] }
  0x18   :  { %188 = vmatpush.bf16.msra.mxu1 %v490_v6  ;;  %v501_v47 = vld [vmem:[%s735_s7] sm:$0xff] }
  0x19   :  { %v518_v49 = vld [vmem:[%s734_s6] ss:$0 sm:$0xff] }
  0x1a   :  { %361 = vmatpush.bf16.msra.mxu3 %v507_v31  ;;  %v519_v58 = vld [vmem:[%s736_s8] ss:$0 sm:$0xff] }
  0x1b   :  { %275 = vmatpush.bf16.msra.mxu2 %v498_v14 }
  0x1c   :  { %189 = vmatpush.bf16.msra.mxu1 %v489_v7 }
  0x1e   :  { %362 = vmatpush.bf16.msra.mxu3 %v506_v32 }
  0x1f   :  { %276 = vmatpush.bf16.msra.mxu2 %v497_v15 }
  0x20   :  { %190 = vmatpush.bf16.msra.mxu1 %v488_v8 }
  0x22   :  { %363 = vmatpush.bf16.msra.mxu3 %v505_v33 }
  0x23   :  { %277 = vmatpush.bf16.msra.mxu2 %v496_v26 }
  0x24   :  { %191 = vmatpush.bf16.msra.mxu1 %v487_v9 }
  0x26   :  { %364 = vmatpush.bf16.msra.mxu3 %v504_v44 }
  0x27   :  { %278 = vmatpush.bf16.msra.mxu2 %v495_v27 }
  0x28   :  { %192 = vmatpush.bf16.msra.mxu1 %v486_v10 }
  0x2a   :  { %365 = vmatpush.bf16.msra.mxu3 %v503_v45 }
  0x2b   :  { %279 = vmatpush.bf16.msra.mxu2 %v494_v28 }
  0x2c   :  { %193 = vmatpush.bf16.msra.mxu1 %v485_v11 }
  0x2e   :  { %366 = vmatpush.bf16.msra.mxu3 %v502_v46 }
  0x2f   :  { %280 = vmatpush.bf16.msra.mxu2 %v493_v29 }
  0x32   :  { %367 = vmatpush.bf16.msra.mxu3 %v501_v47 }
  0x8f   :  { %v108_v16 = vpop.f32.mrf.mxu0 }
  0x90   :  { %v109_v18 = vadd.f32 %v516_v17, %v108_v16 }
  0x92   :  { %v113_v20 = vmul.f32 0.01, %v109_v18 }
  0x94   :  { %v115_v23 = vmax.f32 %v109_v18, %v113_v20 }
  0x97   :  { %v110_v19 = vpop.f32.mrf.mxu0 }
  0x98   :  { %v111_v21 = vadd.f32 %v516_v17, %v110_v19 }
  0x9a   :  { %v114_v22 = vmul.f32 0.01, %v111_v21 }
  0x9c   :  { %v116_v24 = vmax.f32 %v111_v21, %v114_v22 }
  0x9e   :  { %v117_v25 = vpack.c.bf16 %v116_v24, %v115_v23 }
  0xa0   :  { %194 = vmatmul.bf16.vlgmr.msra.gmra.mxu1 %v117_v25 }
 0x11d   :  { %v195_v34 = vpop.f32.mrf.mxu1 }
 0x11e   :  { %v196_v36 = vadd.f32 %v517_v35, %v195_v34 }
 0x120   :  { %v200_v38 = vmul.f32 0.01, %v196_v36 }
 0x122   :  { %v202_v41 = vmax.f32 %v196_v36, %v200_v38 }
 0x125   :  { %v197_v37 = vpop.f32.mrf.mxu1 }
 0x126   :  { %v198_v39 = vadd.f32 %v517_v35, %v197_v37 }
 0x128   :  { %v201_v40 = vmul.f32 0.01, %v198_v39 }
 0x12a   :  { %v203_v42 = vmax.f32 %v198_v39, %v201_v40 }
 0x12c   :  { %v204_v43 = vpack.c.bf16 %v203_v42, %v202_v41 }
 0x12e   :  { %281 = vmatmul.bf16.vlgmr.msra.gmra.mxu2 %v204_v43 }
 0x1b1   :  { %v282_v48 = vpop.f32.mrf.mxu2 }
 0x1b2   :  { %v283_v50 = vadd.f32 %v518_v49, %v282_v48 }
 0x1b4   :  { %v287_v52 = vmul.f32 0.01, %v283_v50 }
 0x1b6   :  { %v289_v55 = vmax.f32 %v283_v50, %v287_v52 }
 0x1b9   :  { %v284_v51 = vpop.f32.mrf.mxu2 }
 0x1ba   :  { %v285_v53 = vadd.f32 %v518_v49, %v284_v51 }
 0x1bc   :  { %v288_v54 = vmul.f32 0.01, %v285_v53 }
 0x1be   :  { %v290_v56 = vmax.f32 %v285_v53, %v288_v54 }
 0x1c0   :  { %v291_v57 = vpack.c.bf16 %v290_v56, %v289_v55 }
 0x1c2   :  { %368 = vmatmul.bf16.vlgmr.msra.gmra.mxu3 %v291_v57 }
 0x245   :  { %v369_v59 = vpop.f32.mrf.mxu3 }
 0x246   :  { %v370_v60 = vadd.f32 %v519_v58, %v369_v59 }
 0x248   :  { %375 = vst.msk [vmem:[%s737_s9] sm:$0xff] %vm374_vm1, %v370_v60 }
 0x24d   :  { %v371_v61 = vpop.f32.mrf.mxu3 }
 0x24e   :  { %v372_v62 = vadd.f32 %v519_v58, %v371_v61 }
 0x250   :  { %376 = vst.msk [vmem:[%s737_s9 + $0x8] sm:$0xff] %vm374_vm1, %v372_v62 }
 0x251   :  { %381 = vsyncpa [#allocation3], 1 }
 0x252   :  { %382 = vsyncpa [#allocation5], 1 }

</bundles_post_ra>
